<compile_context>
chip_gen: v7x
topology: tpu7x:2x2x1
jax: 0.10.0
libtpu: 0.0.40
codegen_flags: <defaults>
</compile_context>

<pallas_src>
import functools

import jax
import jax.numpy as jnp
from jax.experimental import pallas as pl
from jax.experimental.pallas import tpu as pltpu


def _decoder_kernel(x_ref, ln_w_ref, ln_b_ref, w_ref, b_ref, o_ref, acc_ref,
                    *, inv_s, eps, seq_len, seq_tile, has_tail):
    # x_ref:   (TS, TB, D) tile of tokens
    # ln_w_ref/ln_b_ref: (1, D) LayerNorm affine params (resident)
    # w_ref:   (D, C_pad)  head weight, pre-transposed in the wrapper (resident)
    # b_ref:   (1, C_pad)  head bias (resident)
    # o_ref:   (TB, C_pad) logits tile (resident across the seq axis)
    # acc_ref: (TB, D) f32 running token-sum
    s = pl.program_id(1)

    @pl.when(s == 0)
    def _():
        acc_ref[...] = jnp.zeros_like(acc_ref)

    x = x_ref[...]                                             # (TS, TB, D)
    if has_tail:
        # Tail seq block: rows >= S - s*TS hold unspecified data. Zero them
        # with a select (safe even if the garbage is NaN/inf) before summing.
        valid = seq_len - s * seq_tile
        row = jax.lax.broadcasted_iota(jnp.int32, (seq_tile, 1, 1), 0)
        x = jnp.where(row < valid, x, jnp.zeros((), x.dtype))

    # Accumulate the token sum for this tile directly in f32 (no full-tile
    # astype materialization).
    acc_ref[...] += jnp.sum(x, axis=0, dtype=jnp.float32)

    @pl.when(s == pl.num_programs(1) - 1)
    def _():
        # cls = mean over tokens (masked tail rows contribute 0 to the sum).
        cls = acc_ref[...] * inv_s                             # (TB, D) f32

        # LayerNorm over last dim (biased variance, eps matches torch 1e-5).
        mu = jnp.mean(cls, axis=-1, keepdims=True)
        var = jnp.mean((cls - mu) ** 2, axis=-1, keepdims=True)
        xhat = (cls - mu) * jax.lax.rsqrt(var + eps)
        y = xhat * ln_w_ref[...].astype(jnp.float32) + ln_b_ref[...].astype(jnp.float32)

        # Linear head: (TB, D) x (D, C_pad) -> (TB, C_pad); lane-dense RHS,
        # f32 accumulation on the MXU.
        y = y.astype(w_ref.dtype)
        out = jnp.dot(y, w_ref[...], preferred_element_type=jnp.float32)
        out = out + b_ref[...].astype(jnp.float32)
        o_ref[...] = out.astype(o_ref.dtype)


def _round_up(n, m):
    return ((n + m - 1) // m) * m


def _pick_batch_tile(b):
    # For B >= 16 aim for >= 2 batch tiles (multiple of 8) so the "parallel"
    # batch axis can be sharded across v7x's two TensorCores; v5e/v6e just see
    # a slightly finer grid. Small batches stay full-extent (exempt from the
    # (8,128) block rule).
    if b < 16:
        return b
    for tb in (256, 128, 64, 32, 16, 8):
        if tb <= b // 2 and b % tb == 0:
            return tb
    # No clean divisor: ~B/2 rounded to a multiple of 8 with a cdiv grid
    # (out-of-range rows of the last batch block are discarded on write and
    # each output row only depends on its own batch row).
    return min(256, _round_up((b + 1) // 2, 8))


def _vmem_capacity_bytes():
    try:
        return int(pltpu.get_tpu_info().vmem_capacity_bytes)
    except Exception:
        return 64 * 1024 * 1024  # conservative: v7x per-TensorCore VMEM


def decoder_forward(x, ln_weight, ln_bias, lin_weight, lin_bias, *, eps=1e-5):
    """x: (S, B, D); lin_weight: (C, D) torch layout; returns (B, C) logits."""
    S, B, D = x.shape
    C = lin_weight.shape[0]

    # --- class-dim padding: lane-dense output / matmul N dimension ----------
    C_pad = _round_up(max(C, 128), 128)
    if C_pad != C:
        lin_weight = jnp.pad(lin_weight, ((0, C_pad - C), (0, 0)))
        lin_bias = jnp.pad(lin_bias, ((0, C_pad - C),))

    # One-time transpose of the (small) head weight -> (D, C_pad).
    w_t = lin_weight.T
    ln_w = ln_weight.reshape(1, D)
    ln_b = ln_bias.reshape(1, D)
    bias = lin_bias.reshape(1, C_pad)

    # --- tiling --------------------------------------------------------------
    TB = _pick_batch_tile(B)
    n_b = pl.cdiv(B, TB)

    x_itemsize = x.dtype.itemsize
    w_itemsize = w_t.dtype.itemsize

    # Bytes resident in VMEM regardless of the seq tile.
    fixed_bytes = (C_pad * D * w_itemsize            # head weight
                   + 2 * D * 4 + C_pad * 4           # LN params + bias (approx)
                   + 2 * TB * C_pad * x_itemsize     # output (double-buffered)
                   + TB * D * 4)                     # f32 accumulator

    # Generation-aware seq-tile budget: ~8 MiB per x buffer, clamped so
    # 2 x-buffers + resident state stay well inside this chip's VMEM
    # (128 MiB on v5e/v6e, 64 MiB per TC on v7x).
    vmem_cap = _vmem_capacity_bytes()
    x_budget = min(8 * 1024 * 1024,
                   max(512 * 1024, (vmem_cap // 2 - fixed_bytes) // 2))
    bytes_per_row = max(TB * D * x_itemsize, 1)
    TS = max(1, min(S, x_budget // bytes_per_row))
    if TS >= 8:
        TS = (TS // 8) * 8
    n_s = pl.cdiv(S, TS)
    has_tail = (S % TS) != 0     # no wrapper-side seq pad; mask tail in-kernel

    # vmem_limit tracks the actual buffer sizes (+ headroom for compiler scratch).
    vmem_limit = 2 * TS * bytes_per_row + fixed_bytes + (4 << 20)
    vmem_limit = int(max(16 << 20, min(vmem_limit, int(vmem_cap * 0.9))))

    kernel = functools.partial(
        _decoder_kernel, inv_s=1.0 / S, eps=eps,
        seq_len=S, seq_tile=TS, has_tail=has_tail)

    out = pl.pallas_call(
        kernel,
        out_shape=jax.ShapeDtypeStruct((B, C_pad), x.dtype),
        grid_spec=pltpu.PrefetchScalarGridSpec(
            num_scalar_prefetch=0,
            grid=(n_b, n_s),
            in_specs=[
                pl.BlockSpec((TS, TB, D), lambda b, s: (s, b, 0)),
                pl.BlockSpec((1, D), lambda b, s: (0, 0)),
                pl.BlockSpec((1, D), lambda b, s: (0, 0)),
                pl.BlockSpec((D, C_pad), lambda b, s: (0, 0)),
                pl.BlockSpec((1, C_pad), lambda b, s: (0, 0)),
            ],
            out_specs=pl.BlockSpec((TB, C_pad), lambda b, s: (b, 0)),
            scratch_shapes=[pltpu.VMEM((TB, D), jnp.float32)],
        ),
        compiler_params=pltpu.CompilerParams(
            dimension_semantics=("parallel", "arbitrary"),
            vmem_limit_bytes=vmem_limit,
        ),
    )(x, ln_w, ln_b, w_t, bias)

    return out[:, :C]


if __name__ == "__main__":
    # Small, deterministic example consistent with the module:
    # tokens S=8, batch B=2, embed_dim D=32, num_classes C=16.
    S, B, D, C = 8, 2, 32, 16
    key = jax.random.PRNGKey(0)
    kx, kw, kb = jax.random.split(key, 3)

    x = jax.random.normal(kx, (S, B, D), dtype=jnp.float32)

    # LayerNorm: torch defaults (ones / zeros); Linear: small random init.
    ln_weight = jnp.ones((D,), dtype=jnp.float32)
    ln_bias = jnp.zeros((D,), dtype=jnp.float32)
    lin_weight = jax.random.normal(kw, (C, D), dtype=jnp.float32) * 0.02
    lin_bias = jax.random.normal(kb, (C,), dtype=jnp.float32) * 0.01

    out = decoder_forward(x, ln_weight, ln_bias, lin_weight, lin_bias)
    out = jax.block_until_ready(out)

    # Pure-JAX reference.
    cls = x.mean(0)
    mu = cls.mean(-1, keepdims=True)
    var = ((cls - mu) ** 2).mean(-1, keepdims=True)
    ref = (cls - mu) / jnp.sqrt(var + 1e-5) * ln_weight + ln_bias
    ref = ref @ lin_weight.T + lin_bias

    assert out.shape == (B, C)
    assert jnp.allclose(out, ref, atol=1e-4, rtol=1e-4)
    print("KERNEL_OK")
</pallas_src>

<mosaic_0001>
module attributes {stable_mosaic.version = 11 : i64} {
  func.func @_decoder_kernel(%arg0: i32, %arg1: i32, %arg2: memref<8x2x32xf32, #tpu.memory_space<vmem>>, %arg3: memref<1x32xf32, #tpu.memory_space<vmem>>, %arg4: memref<1x32xf32, #tpu.memory_space<vmem>>, %arg5: memref<32x128xf32, #tpu.memory_space<vmem>>, %arg6: memref<1x128xf32, #tpu.memory_space<vmem>>, %arg7: memref<2x128xf32, #tpu.memory_space<vmem>>, %arg8: memref<2x32xf32, #tpu.memory_space<vmem>>) attributes {dimension_semantics = [#tpu.dimension_semantics<parallel>, #tpu.dimension_semantics<arbitrary>], iteration_bounds = array<i64: 1, 1>, scalar_prefetch = 0 : i64, scratch_operands = 1 : i64, tpu.core_type = #tpu.core_type<tc>, window_params = [{transform_indices = @transform_0, window_bounds = array<i64: 8, 2, 32>}, {pipeline_mode = #tpu.pipeline_mode<synchronous>, transform_indices = @transform_1, window_bounds = array<i64: 1, 32>}, {pipeline_mode = #tpu.pipeline_mode<synchronous>, transform_indices = @transform_2, window_bounds = array<i64: 1, 32>}, {pipeline_mode = #tpu.pipeline_mode<synchronous>, transform_indices = @transform_3, window_bounds = array<i64: 32, 128>}, {pipeline_mode = #tpu.pipeline_mode<synchronous>, transform_indices = @transform_4, window_bounds = array<i64: 1, 128>}, {transform_indices = @transform_5, window_bounds = array<i64: 2, 128>}]} {
    %c0_i32 = arith.constant 0 : i32
    %0 = arith.cmpi eq, %arg1, %c0_i32 : i32
    %1 = arith.extui %0 : i1 to i32
    %c0_i32_0 = arith.constant 0 : i32
    %2 = arith.cmpi ne, %1, %c0_i32_0 : i32
    scf.if %2 {
      %cst_9 = arith.constant 0.000000e+00 : f32
      %11 = vector.broadcast %cst_9 : f32 to vector<2x32xf32>
      %c0_10 = arith.constant 0 : index
      %c0_11 = arith.constant 0 : index
      %12 = vector.load %arg8[%c0_10, %c0_11] : memref<2x32xf32, #tpu.memory_space<vmem>>, vector<2x32xf32>
      tpu.vector_store %arg8[%c0_10, %c0_11], %11 {strides = array<i32>} : memref<2x32xf32, #tpu.memory_space<vmem>>, vector<2x32xf32>,
    } else {
    }
    %c0 = arith.constant 0 : index
    %c0_1 = arith.constant 0 : index
    %c0_2 = arith.constant 0 : index
    %3 = vector.load %arg2[%c0, %c0_1, %c0_2] : memref<8x2x32xf32, #tpu.memory_space<vmem>>, vector<8x2x32xf32>
    %c0_3 = arith.constant 0 : index
    %c0_4 = arith.constant 0 : index
    %4 = vector.load %arg8[%c0_3, %c0_4] : memref<2x32xf32, #tpu.memory_space<vmem>>, vector<2x32xf32>
    %cst = arith.constant dense<0.000000e+00> : vector<2x32xf32>
    %5 = vector.multi_reduction <add>, %3, %cst [0] : vector<8x2x32xf32> to vector<2x32xf32>
    %6 = arith.addf %4, %5 : vector<2x32xf32>
    %c0_5 = arith.constant 0 : index
    %c0_6 = arith.constant 0 : index
    %7 = vector.load %arg8[%c0_5, %c0_6] : memref<2x32xf32, #tpu.memory_space<vmem>>, vector<2x32xf32>
    tpu.vector_store %arg8[%c0_5, %c0_6], %6 {strides = array<i32>} : memref<2x32xf32, #tpu.memory_space<vmem>>, vector<2x32xf32>,
    %c0_i32_7 = arith.constant 0 : i32
    %8 = arith.cmpi eq, %arg1, %c0_i32_7 : i32
    %9 = arith.extui %8 : i1 to i32
    %c0_i32_8 = arith.constant 0 : i32
    %10 = arith.cmpi ne, %9, %c0_i32_8 : i32
    scf.if %10 {
      %c0_9 = arith.constant 0 : index
      %c0_10 = arith.constant 0 : index
      %11 = vector.load %arg8[%c0_9, %c0_10] : memref<2x32xf32, #tpu.memory_space<vmem>>, vector<2x32xf32>
      %cst_11 = arith.constant 1.250000e-01 : f32
      %12 = vector.broadcast %cst_11 : f32 to vector<2x32xf32>
      %13 = arith.mulf %11, %12 : vector<2x32xf32>
      %cst_12 = arith.constant dense<0.000000e+00> : vector<2xf32>
      %14 = vector.multi_reduction <add>, %13, %cst_12 [1] : vector<2x32xf32> to vector<2xf32>
      %15 = vector.shape_cast %14 : vector<2xf32> to vector<2x1xf32>
      %cst_13 = arith.constant 3.200000e+01 : f32
      %16 = vector.broadcast %cst_13 : f32 to vector<2x1xf32>
      %17 = arith.divf %15, %16 : vector<2x1xf32>
      %18 = vector.broadcast %17 : vector<2x1xf32> to vector<2x32xf32>
      %19 = arith.subf %13, %18 : vector<2x32xf32>
      %20 = arith.mulf %19, %19 : vector<2x32xf32>
      %cst_14 = arith.constant dense<0.000000e+00> : vector<2xf32>
      %21 = vector.multi_reduction <add>, %20, %cst_14 [1] : vector<2x32xf32> to vector<2xf32>
      %22 = vector.shape_cast %21 : vector<2xf32> to vector<2x1xf32>
      %cst_15 = arith.constant 3.200000e+01 : f32
      %23 = vector.broadcast %cst_15 : f32 to vector<2x1xf32>
      %24 = arith.divf %22, %23 : vector<2x1xf32>
      %25 = vector.broadcast %17 : vector<2x1xf32> to vector<2x32xf32>
      %26 = arith.subf %13, %25 : vector<2x32xf32>
      %cst_16 = arith.constant 9.99999974E-6 : f32
      %27 = vector.broadcast %cst_16 : f32 to vector<2x1xf32>
      %28 = arith.addf %24, %27 : vector<2x1xf32>
      %29 = math.rsqrt %28 : vector<2x1xf32>
      %30 = vector.broadcast %29 : vector<2x1xf32> to vector<2x32xf32>
      %31 = arith.mulf %26, %30 : vector<2x32xf32>
      %c0_17 = arith.constant 0 : index
      %c0_18 = arith.constant 0 : index
      %32 = vector.load %arg3[%c0_17, %c0_18] : memref<1x32xf32, #tpu.memory_space<vmem>>, vector<1x32xf32>
      %33 = vector.broadcast %32 : vector<1x32xf32> to vector<2x32xf32>
      %34 = arith.mulf %31, %33 : vector<2x32xf32>
      %c0_19 = arith.constant 0 : index
      %c0_20 = arith.constant 0 : index
      %35 = vector.load %arg4[%c0_19, %c0_20] : memref<1x32xf32, #tpu.memory_space<vmem>>, vector<1x32xf32>
      %36 = vector.broadcast %35 : vector<1x32xf32> to vector<2x32xf32>
      %37 = arith.addf %34, %36 : vector<2x32xf32>
      %c0_21 = arith.constant 0 : index
      %c0_22 = arith.constant 0 : index
      %38 = vector.load %arg5[%c0_21, %c0_22] : memref<32x128xf32, #tpu.memory_space<vmem>>, vector<32x128xf32>
      %cst_23 = arith.constant dense<0.000000e+00> : vector<2x128xf32>
      %39 = tpu.matmul %37, %38, %cst_23 {dimension_numbers = #tpu.dot_dimension_numbers<[1], [0], [0], [1], [0, 0, 1, 1], [], []>} : vector<2x32xf32>, vector<32x128xf32>, vector<2x128xf32> -> vector<2x128xf32>
      %c0_24 = arith.constant 0 : index
      %c0_25 = arith.constant 0 : index
      %40 = vector.load %arg6[%c0_24, %c0_25] : memref<1x128xf32, #tpu.memory_space<vmem>>, vector<1x128xf32>
      %41 = vector.broadcast %40 : vector<1x128xf32> to vector<2x128xf32>
      %42 = arith.addf %39, %41 : vector<2x128xf32>
      %c0_26 = arith.constant 0 : index
      %c0_27 = arith.constant 0 : index
      %43 = vector.load %arg7[%c0_26, %c0_27] : memref<2x128xf32, #tpu.memory_space<vmem>>, vector<2x128xf32>
      tpu.vector_store %arg7[%c0_26, %c0_27], %42 {strides = array<i32>} : memref<2x128xf32, #tpu.memory_space<vmem>>, vector<2x128xf32>,
    } else {
    }
    return
  }
  func.func @transform_0(%arg0: i32, %arg1: i32) -> (i32, i32, i32) {
    %c0_i32 = arith.constant 0 : i32
    %c0_i32_0 = arith.constant 0 : i32
    return %arg1, %arg0, %c0_i32 : i32, i32, i32
  }
  func.func @transform_1(%arg0: i32, %arg1: i32) -> (i32, i32) {
    %c0_i32 = arith.constant 0 : i32
    %c0_i32_0 = arith.constant 0 : i32
    %c0_i32_1 = arith.constant 0 : i32
    return %c0_i32, %c0_i32_0 : i32, i32
  }
  func.func @transform_2(%arg0: i32, %arg1: i32) -> (i32, i32) {
    %c0_i32 = arith.constant 0 : i32
    %c0_i32_0 = arith.constant 0 : i32
    %c0_i32_1 = arith.constant 0 : i32
    return %c0_i32, %c0_i32_0 : i32, i32
  }
  func.func @transform_3(%arg0: i32, %arg1: i32) -> (i32, i32) {
    %c0_i32 = arith.constant 0 : i32
    %c0_i32_0 = arith.constant 0 : i32
    %c0_i32_1 = arith.constant 0 : i32
    return %c0_i32, %c0_i32_0 : i32, i32
  }
  func.func @transform_4(%arg0: i32, %arg1: i32) -> (i32, i32) {
    %c0_i32 = arith.constant 0 : i32
    %c0_i32_0 = arith.constant 0 : i32
    %c0_i32_1 = arith.constant 0 : i32
    return %c0_i32, %c0_i32_0 : i32, i32
  }
  func.func @transform_5(%arg0: i32, %arg1: i32) -> (i32, i32) {
    %c0_i32 = arith.constant 0 : i32
    %c0_i32_0 = arith.constant 0 : i32
    return %arg0, %c0_i32 : i32, i32
  }
}

</mosaic_0001>

<bundles_post_ra>
// kernel: tpu_custom_call.1
= control target key start
LH: loop header
LB: loop body
LE: loop exit
PB: predicated region body
PF: predicated region fallthrough
CT: control target
= control target key end

     0   :  { %10 = vsyncpa [#allocation4], 0  ;;  %s426_s0 = inlined_call_operand.hbm [shape: f32[8,2,32], index: 0, kind: input, shape index: {}]   ;;  %s427_s1 = inlined_call_operand.vmem [shape: f32[1,32], index: 1, kind: input, shape index: {}]   ;;  %s428_s2 = inlined_call_operand.vmem [shape: f32[1,32], index: 2, kind: input, shape index: {}]   ;;  %s429_s3 = inlined_call_operand.hbm [shape: f32[32,128], index: 3, kind: input, shape index: {}]   ;;  %s430_s4 = inlined_call_operand.vmem [shape: f32[1,128], index: 4, kind: input, shape index: {}]   ;;  %s431_s5 = inlined_call_operand.hbm [shape: f32[2,128], index: 5, kind: output, shape index: {}]  }
   0x1   :  { %11 = vsyncpa [#allocation7], 0 }
   0x2   :  { %12 = vsyncpa [#allocation5], 0  ;;  %s329_s18 = smov [#allocation3]   ;;  %s257_s22 = scalar_lea.hbm %s426_s0, 256 }
   0x3   :  { %s18_s19 = sshll.u32 %s329_s18, 4  ;;  %p258_p0 = scmp.ne.s32.totalorder %s426_s0, %s257_s22  ;;  %s19_s19 = int_to_ptr.vmem [resolvable:$true] %s18_s19 }
   0x4   :  { %p261_p1 = scmp.lt.u32.totalorder %s257_s22, %s426_s0 }
   0x6   :  { %p263_p2 = pnand %p261_p1, %p258_p0 }
   0x8   :  { %266 = shalt.err (!%p263_p2)
}
   0x9   :  { %s267_s27 = scalar_lea.vmem %s19_s19, 256  ;;  %p272_p4 = scmp.lt.s32.totalorder %s19_s19, %s19_s19 }
   0xa   :  { %p268_p3 = scmp.ne.s32.totalorder %s19_s19, %s267_s27  ;;  %p273_p5 = scmp.lt.s32.totalorder %s267_s27, %s267_s27 }
   0xc   :  { %p274_p6 = por %p273_p5, %p272_p4 }
   0xe   :  { %p275_p7 = pnand %p274_p6, %p268_p3 }
  0x10   :  { %278 = shalt.err (!%p275_p7)
}
  0x11   :  { %s330_s28 = smov 32   ;;  %s331_s29 = smov 2  }
  0x12   :  { %24 = dma.hbm_to_vmem [thread:$0]  %s426_s0, 256, %s19_s19, [#allocation4], %s330_s28, %s330_s28, %s331_s29  }
  0x13   :  { %s332_s7 = smov [#allocation6]   ;;  %s279_s11 = scalar_lea.hbm %s429_s3, 512 }
  0x14   :  { %s34_s8 = sshll.u32 %s332_s7, 4  ;;  %p280_p8 = scmp.ne.s32.totalorder %s429_s3, %s279_s11  ;;  %s35_s8 = int_to_ptr.vmem [resolvable:$true] %s34_s8 }
  0x15   :  { %p283_p9 = scmp.lt.u32.totalorder %s279_s11, %s429_s3 }
  0x17   :  { %p285_p10 = pnand %p283_p9, %p280_p8 }
  0x19   :  { %288 = shalt.err (!%p285_p10)
}
  0x1a   :  { %s289_s16 = scalar_lea.vmem %s35_s8, 512  ;;  %p294_p12 = scmp.lt.s32.totalorder %s35_s8, %s35_s8 }
  0x1b   :  { %p290_p11 = scmp.ne.s32.totalorder %s35_s8, %s289_s16  ;;  %p295_p13 = scmp.lt.s32.totalorder %s289_s16, %s289_s16 }
  0x1d   :  { %p296_p0 = por %p295_p13, %p294_p12 }
  0x1f   :  { %p297_p1 = pnand %p296_p0, %p290_p11 }
  0x21   :  { %300 = shalt.err (!%p297_p1)
}
  0x22   :  { %s333_s0 = smov 128   ;;  %s334_s17 = smov 8  }
  0x23   :  { %40 = dma.hbm_to_vmem [thread:$0]  %s429_s3, 512, %s35_s8, [#allocation7], %s333_s0, %s333_s0, %s334_s17  }
  0x24   :  { %323 = dma.done.wait [#allocation4], 256  }
  0x25   :  { %324 = vsyncadd [#allocation4], 4294967040 }
  0x26   :  { %325 = dma.done.wait [#allocation7], 512  }
  0x27   :  { %326 = vsyncadd [#allocation7], 4294966784  ;;  %vm53_vm0 = vcmask 254976   ;;  %v335_v0 = vmov 0.0   ;;  %v55_v1 = vld [vmem:[#allocation3] sm:$0x3] }
  0x28   :  { %54 = vst.msk [vmem:[#allocation2] sm:$0x3] %vm53_vm0, %v335_v0  ;;  %v56_v2 = vld [vmem:[#allocation3 + $0x2] sm:$0x3]  ;;  %v57_v3 = vld [vmem:[#allocation3 + $0x4] sm:$0x3] }
  0x29   :  { %v58_v4 = vld [vmem:[#allocation3 + $0x6] sm:$0x3]  ;;  %v65_v5 = vsel %vm53_vm0, %v55_v1, 0.0  ;;  %v66_v6 = vsel %vm53_vm0, %v56_v2, 0.0  ;;  %v68_v7 = vsel %vm53_vm0, %v57_v3, 0.0  ;;  %v117_v34 = vld [vmem:[#allocation6] sm:$0xff] }
  0x2a   :  { %v59_v8 = vld [vmem:[#allocation3 + $0x8] sm:$0x3]  ;;  %v67_v9 = vadd.f32 %v66_v6, %v65_v5  ;;  %v70_v10 = vsel %vm53_vm0, %v58_v4, 0.0  ;;  %v60_v11 = vld [vmem:[#allocation3 + $0xa] sm:$0x3]  ;;  %v118_v35 = vld [vmem:[#allocation6 + $0x8] sm:$0xff] }
  0x2b   :  { %v72_v13 = vsel %vm53_vm0, %v59_v8, 0.0  ;;  %v61_v14 = vld [vmem:[#allocation3 + $0xc] sm:$0x3]  ;;  %v74_v16 = vsel %vm53_vm0, %v60_v11, 0.0  ;;  %v62_v17 = vld [vmem:[#allocation3 + $0xe] sm:$0x3]  ;;  %v240_v38 = vpack.c.bf16 %v118_v35, %v117_v34 }
  0x2c   :  { %v69_v12 = vadd.f32 %v68_v7, %v67_v9  ;;  %v76_v19 = vsel %vm53_vm0, %v61_v14, 0.0  ;;  %v78_v21 = vsel %vm53_vm0, %v62_v17, 0.0  ;;  %v119_v36 = vld [vmem:[#allocation6 + $0x10] sm:$0xff]  ;;  %v336_v37 = vmov 0.0|0.0   ;;  %v120_v39 = vld [vmem:[#allocation6 + $0x18] sm:$0xff]  ;;  %s338_s25 = smov [#allocation8]  }
  0x2d   :  { %239 = vmatprep.subr.bf16.mxu0 %v336_v37  ;;  %vm337_vm1 = vmmov 0   ;;  %v243_v40 = vpack.c.bf16 %v120_v39, %v119_v36  ;;  %v219_v45 = vld [vmem:[%s427_s1] ss:$0 sm:$0xff]  ;;  %vm128_vm2 = vcmask 261120   ;;  %s209_s26 = sshll.u32 %s338_s25, 4  ;;  %s210_s26 = int_to_ptr.vmem [resolvable:$true] %s209_s26 }
  0x2e   :  { %v71_v15 = vadd.f32 %v70_v10, %v69_v12  ;;  %236 = vmatprep.mubr.msk.f32.mxu0 %vm337_vm1, %v335_v0  ;;  %241 = vmatpush3.bf16.msra.mxu0 %v240_v38  ;;  %v220_v47 = vld [vmem:[%s428_s2] ss:$0 sm:$0xff]  ;;  %s301_s1 = scalar_lea.vmem %s210_s26, 32  ;;  %p306_p3 = scmp.lt.s32.totalorder %s210_s26, %s210_s26 }
  0x2f   :  { %v63_v23 = vld [vmem:[#allocation2] sm:$0x3]  ;;  %242 = vmatprep.subr.bf16.mxu0 %v336_v37  ;;  %p302_p2 = scmp.ne.s32.totalorder %s210_s26, %s301_s1  ;;  %p307_p4 = scmp.lt.s32.totalorder %s301_s1, %s301_s1 }
  0x30   :  { %v73_v18 = vadd.f32 %v72_v13, %v71_v15  ;;  %v221_v50 = vld [vmem:[%s430_s4] ss:$0 sm:$0xff] }
  0x31   :  { %p308_p5 = por %p307_p4, %p306_p3 }
  0x32   :  { %v75_v20 = vadd.f32 %v74_v16, %v73_v18  ;;  %244 = vmatpush3.bf16.msra.mxu0 %v243_v40 }
  0x33   :  { %p309_p6 = pnand %p308_p5, %p302_p2 }
  0x34   :  { %v77_v22 = vadd.f32 %v76_v19, %v75_v20 }
  0x36   :  { %v79_v24 = vadd.f32 %v78_v21, %v77_v22 }
  0x38   :  { %v80_v25 = vadd.f32 %v79_v24, %v63_v23 }
  0x3a   :  { %81 = vst.msk [vmem:[#allocation2] sm:$0x3] %vm53_vm0, %v80_v25 }
  0x41   :  { %v85_v26 = vld [vmem:[#allocation2] sm:$0x3] }
  0x42   :  { %v86_v27 = vmul.f32 0.125, %v85_v26 }
  0x44   :  { %v87_v28 = vsel %vm53_vm0, %v86_v27, 0.0 }
  0x45   :  { %88 = vadd.xlane.f32.xlu0 %v87_v28 }
  0xd2   :  { %v89_v29 = vpop.xlane.xlu0 %88 }
  0xd3   :  { %v91_v30 = vmul.f32 0.03125, %v89_v29 }
  0xd5   :  { %v92_v31 = vsub.f32 %v86_v27, %v91_v30 }
  0xd7   :  { %v93_v32 = vmul.f32 %v92_v31, %v92_v31 }
  0xd9   :  { %v94_v33 = vsel %vm53_vm0, %v93_v32, 0.0 }
  0xda   :  { %95 = vadd.xlane.f32.xlu0 %v94_v33 }
 0x167   :  { %v96_v41 = vpop.xlane.xlu0 %95 }
 0x168   :  { %v97_v42 = vmul.f32 0.03125, %v96_v41 }
 0x16a   :  { %v98_v43 = vadd.f32 1e-05, %v97_v42 }
 0x16c   :  { %255 = vrsqrt.f32 %v98_v43 }
 0x176   :  { %v256_v44 = vpop.eup %255 }
 0x177   :  { %v100_v46 = vmul.f32 %v256_v44, %v92_v31 }
 0x179   :  { %v108_v48 = vmul.f32 %v219_v45, %v100_v46 }
 0x17b   :  { %v116_v49 = vadd.f32 %v220_v47, %v108_v48 }
 0x17d   :  { %237 = vmatmul.mubr.msk.f32.vlgmr.msra.gmra.mrb[0].mxu0 %vm128_vm2, %v116_v49 }
 0x250   :  { %v198_v51 = vpop.f32.mrb[0].mxu0 }
 0x251   :  { %v199_v52 = vadd.f32 %v221_v50, %v198_v51  ;;  %v238_v53 = vpop.f32.mrb[1].mxu0 }
 0x253   :  { %202 = vst [vmem:[#allocation8] sm:$0x3] %v199_v52 }
 0x254   :  { %312 = shalt.err (!%p309_p6)
}
 0x255   :  { %s313_s28 = scalar_lea.hbm %s431_s5, 32 }
 0x256   :  { %p314_p7 = scmp.ne.s32.totalorder %s431_s5, %s313_s28  ;;  %p317_p8 = scmp.lt.u32.totalorder %s313_s28, %s431_s5 }
 0x258   :  { %p319_p9 = pnand %p317_p8, %p314_p7 }
 0x25a   :  { %322 = shalt.err (!%p319_p9)
}
 0x25b   :  { %212 = dma.vmem_to_hbm [thread:$0]  %s210_s26, 32, %s431_s5, [#allocation5]  }
 0x25c   :  { %327 = dma.done.wait [#allocation5], 32  }
 0x25d   :  { %328 = vsyncadd [#allocation5], 4294967264 }
 0x25e   :  { %216 = vsyncpa [#allocation4], 1 }
 0x25f   :  { %217 = vsyncpa [#allocation7], 1 }
 0x260   :  { %218 = vsyncpa [#allocation5], 1 }

</bundles_post_ra>
